<compile_context>
chip_gen: v7x
topology: tpu7x:2x2x1
jax: 0.10.0
libtpu: 0.0.40
codegen_flags: <defaults>
</compile_context>

<pallas_src>
import functools
import math

import jax
import jax.numpy as jnp
from jax.experimental import pallas as pl
from jax.experimental.pallas import tpu as pltpu

# ----------------------------- model hyper-parameters -----------------------------
B = 2              # logical batch
BP = 8             # padded batch (sublane granularity)
H_IMG = 16         # image height
W_IMG = 16         # image width
C = 1              # num_channels
G = 4              # sample_dim (glimpse patch size)
K = 2              # num_foveated_patches
S = 2              # fovea_scale
H_G = 32           # hidden size of the "what" pathway
H_L = 32           # hidden size of the "where" pathway
HIDDEN = 32        # rnn hidden size
NUM_CLASSES = 10
STD = 0.1          # std of the Gaussian location policy

D_PHI = K * G * G * C          # flattened glimpse feature dim (32)
D_G = H_G + H_L                # glimpse-network output dim (rnn input dim, 64)
HEAD_FEAT = HIDDEN // 2        # location-net hidden size (16)
HEAD_OUT = HEAD_FEAT + 1 + NUM_CLASSES   # fused head output width (27)

LANES = 128
INV_STD = 1.0 / STD
LOG_STD = math.log(STD)
HALF_LOG_2PI = 0.5 * math.log(2.0 * math.pi)

# activation-slab column layout: [phi | l_prev | h_prev | noise | pad]
A_PHI = 0
A_L = D_PHI                    # 32
A_H0 = D_PHI + 2               # 34
A_NOISE = A_H0 + HIDDEN        # 66
A_USED = A_NOISE + 2           # 68

# output-slab column layout: [h_t | l_t | b_t | log_probas | log_pi | pad]
O_H = 0
O_L = HIDDEN                   # 32
O_B = HIDDEN + 2               # 34
O_LOGP = HIDDEN + 3            # 35
O_LOGPI = HIDDEN + 3 + NUM_CLASSES   # 45
O_USED = O_LOGPI + 1           # 46

# ----------------------------- weight-slab layout -----------------------------
def _ru8(n):
    return (n + 7) // 8 * 8

_SECTIONS = [
    ("W12", D_PHI + 2),        # block-diag(fc1, fc2): (34, 64)
    ("B12", 1),                # (1, 64)
    ("W34", D_G),              # vstack(fc3, fc4): (64, 64)
    ("B34", 1),                # (1, 64)  (b3 + b4)
    ("WCORE", D_G + HIDDEN),   # vstack(i2h, h2h): (96, 32)
    ("BCORE", 1),              # (1, 32)  (bi + bh)
    ("WHEAD", HIDDEN),         # hstack(loc-fc, baseline, classifier): (32, 27)
    ("BHEAD", 1),              # (1, 27)
    ("WL2", HEAD_FEAT),        # loc-net second fc: (16, 2)
    ("BL2", 1),                # (1, 2)
]
OFF = {}
_off = 0
for _name, _rows in _SECTIONS:
    OFF[_name] = _off
    _off += _ru8(_rows)
SLAB_ROWS = _off               # 288


# ----------------------------- retina foveation (glue) ----------------------------
def foveate(x, l, g=G, k=K, s=S):
    """Extract k patches of sizes g, g*s, ... centered at l, avg-pool each to g x g,
    flatten and concatenate -> (B, k*g*g*C).  x: (B, H, W, C) NHWC, l in [-1, 1]."""
    b, h, w, c = x.shape
    max_size = g * (s ** (k - 1))
    pad = max_size // 2 + 1
    xp = jnp.pad(x, ((0, 0), (pad, pad), (pad, pad), (0, 0)))
    coords = 0.5 * ((l + 1.0) * jnp.array([h, w], jnp.float32))  # (B, 2) = (row, col)

    phis = []
    for i in range(k):
        size = g * (s ** i)

        def extract_one(img, cc, size=size):
            r0 = jnp.round(cc[0]).astype(jnp.int32) + pad - size // 2
            c0 = jnp.round(cc[1]).astype(jnp.int32) + pad - size // 2
            return jax.lax.dynamic_slice(img, (r0, c0, 0), (size, size, c))

        patch = jax.vmap(extract_one)(xp, coords)          # (B, size, size, C)
        if size > g:
            f = size // g
            patch = patch.reshape(b, g, f, g, f, c).mean(axis=(2, 4))
        phis.append(patch.reshape(b, -1))
    return jnp.concatenate(phis, axis=1)                    # (B, D_PHI)


# ----------------------------- fused RAM Pallas kernel -----------------------------
def ram_kernel(act_ref, w_ref, out_ref):
    f32 = jnp.float32
    acts = act_ref[...]                                   # (BP, 128)
    phi_l = acts[:, A_PHI:A_PHI + D_PHI + 2]              # (BP, 34) = [phi | l_prev]
    h_prev = acts[:, A_H0:A_H0 + HIDDEN]                  # (BP, 32)
    noise = acts[:, A_NOISE:A_NOISE + 2]                  # (BP, 2)

    # --- GlimpseNetwork: g_t = relu(fc3(relu(fc1(phi))) + fc4(relu(fc2(l)))) ---
    # fc1/fc2 fused as one block-diagonal matmul; fc3/fc4 fused as one stacked matmul.
    w12 = w_ref[OFF["W12"]:OFF["W12"] + D_PHI + 2, 0:D_G]
    b12 = w_ref[OFF["B12"]:OFF["B12"] + 1, 0:D_G]
    u = jnp.maximum(jnp.dot(phi_l, w12, preferred_element_type=f32) + b12, 0.0)

    w34 = w_ref[OFF["W34"]:OFF["W34"] + D_G, 0:D_G]
    b34 = w_ref[OFF["B34"]:OFF["B34"] + 1, 0:D_G]
    g_t = jnp.maximum(jnp.dot(u, w34, preferred_element_type=f32) + b34, 0.0)

    # --- CoreNetwork: h_t = relu(i2h(g_t) + h2h(h_prev)), fused into one matmul ---
    w_core = w_ref[OFF["WCORE"]:OFF["WCORE"] + D_G + HIDDEN, 0:HIDDEN]
    b_core = w_ref[OFF["BCORE"]:OFF["BCORE"] + 1, 0:HIDDEN]
    gh = jnp.concatenate([g_t, h_prev], axis=1)           # (BP, 96)
    h_t = jnp.maximum(jnp.dot(gh, w_core, preferred_element_type=f32) + b_core, 0.0)

    # --- Fused heads on h_t: [loc-fc | baseline | classifier] in one matmul ---
    w_head = w_ref[OFF["WHEAD"]:OFF["WHEAD"] + HIDDEN, 0:HEAD_OUT]
    b_head = w_ref[OFF["BHEAD"]:OFF["BHEAD"] + 1, 0:HEAD_OUT]
    heads = jnp.dot(h_t, w_head, preferred_element_type=f32) + b_head   # (BP, 27)
    feat = jnp.maximum(heads[:, 0:HEAD_FEAT], 0.0)                      # loc hidden
    b_t = heads[:, HEAD_FEAT:HEAD_FEAT + 1]                             # baseline
    logits = heads[:, HEAD_FEAT + 1:HEAD_OUT]                           # classifier

    # --- LocationNetwork tail: mu = tanh(fc_lt(feat)); l ~ N(mu, std) ---
    w_l2 = w_ref[OFF["WL2"]:OFF["WL2"] + HEAD_FEAT, 0:2]
    b_l2 = w_ref[OFF["BL2"]:OFF["BL2"] + 1, 0:2]
    mu = jnp.tanh(jnp.dot(feat, w_l2, preferred_element_type=f32) + b_l2)
    l_samp = mu + STD * noise                             # rsample (noise supplied)
    # NOTE: log_pi uses the unclipped sample (matches the previous implementation).
    z = (l_samp - mu) * INV_STD
    log_pi = jnp.sum(-0.5 * z * z - LOG_STD - HALF_LOG_2PI, axis=1, keepdims=True)
    l_t = jnp.clip(l_samp, -1.0, 1.0)

    # --- ActionNetwork: log_softmax(logits) ---
    m = jnp.max(logits, axis=1, keepdims=True)
    lse = m + jnp.log(jnp.sum(jnp.exp(logits - m), axis=1, keepdims=True))
    log_probas = logits - lse

    # --- single lane-dense packed store ---
    pad = jnp.zeros((acts.shape[0], LANES - O_USED), f32)
    out_ref[...] = jnp.concatenate([h_t, l_t, b_t, log_probas, log_pi, pad], axis=1)


# ----------------------------- parameter init & packing -----------------------------
def init_params(key):
    """Deterministic synthetic per-layer parameters (same shapes as PyTorch module)."""
    shapes = [
        ("w1", (D_PHI, H_G)), ("b1", (1, H_G)),
        ("w2", (2, H_L)), ("b2", (1, H_L)),
        ("w3", (H_G, D_G)), ("b3", (1, D_G)),
        ("w4", (H_L, D_G)), ("b4", (1, D_G)),
        ("wi", (D_G, HIDDEN)), ("bi", (1, HIDDEN)),
        ("wh", (HIDDEN, HIDDEN)), ("bh", (1, HIDDEN)),
        ("wl1", (HIDDEN, HEAD_FEAT)), ("bl1", (1, HEAD_FEAT)),
        ("wl2", (HEAD_FEAT, 2)), ("bl2", (1, 2)),
        ("wb", (HIDDEN, 1)), ("bb", (1, 1)),
        ("wc", (HIDDEN, NUM_CLASSES)), ("bc", (1, NUM_CLASSES)),
    ]
    params = []
    keys = jax.random.split(key, len(shapes))
    for (name, shp), k in zip(shapes, keys):
        if name.startswith("w"):
            params.append(0.1 * jax.random.normal(k, shp, jnp.float32))
        else:
            params.append(jnp.zeros(shp, jnp.float32))
    return params


def pack_params(params):
    """Fuse the tiny per-layer matmuls and pack everything into one lane-dense
    (SLAB_ROWS, 128) f32 slab -> a single input DMA for the kernel."""
    (w1, b1, w2, b2, w3, b3, w4, b4,
     wi, bi, wh, bh,
     wl1, bl1, wl2, bl2,
     wb, bb, wc, bc) = params

    w12 = jnp.zeros((D_PHI + 2, D_G), jnp.float32)
    w12 = w12.at[:D_PHI, :H_G].set(w1)          # block-diagonal fc1 | fc2
    w12 = w12.at[D_PHI:, H_G:].set(w2)
    b12 = jnp.concatenate([b1, b2], axis=1)                         # (1, 64)

    w34 = jnp.concatenate([w3, w4], axis=0)                         # (64, 64)
    b34 = b3 + b4                                                   # (1, 64)

    w_core = jnp.concatenate([wi, wh], axis=0)                      # (96, 32)
    b_core = bi + bh                                                # (1, 32)

    w_head = jnp.concatenate([wl1, wb, wc], axis=1)                 # (32, 27)
    b_head = jnp.concatenate([bl1, bb, bc], axis=1)                 # (1, 27)

    pieces = {
        "W12": w12, "B12": b12, "W34": w34, "B34": b34,
        "WCORE": w_core, "BCORE": b_core,
        "WHEAD": w_head, "BHEAD": b_head,
        "WL2": wl2, "BL2": bl2,
    }
    slab = jnp.zeros((SLAB_ROWS, LANES), jnp.float32)
    for name, arr in pieces.items():
        r, c = arr.shape
        slab = slab.at[OFF[name]:OFF[name] + r, :c].set(arr)
    return slab


# ----------------------------- wrapper -----------------------------
@functools.partial(jax.jit, static_argnames=("last",))
def ram_forward(x, l_t_prev, h_t_prev, noise, w_slab, last=True):
    b = x.shape[0]
    phi = foveate(x, l_t_prev)                               # (B, D_PHI)

    # pack activations into one lane-dense slab, batch padded to 8 sublanes
    acts = jnp.zeros((BP, LANES), jnp.float32)
    acts = acts.at[:b, A_PHI:A_PHI + D_PHI].set(phi)
    acts = acts.at[:b, A_L:A_L + 2].set(l_t_prev)
    acts = acts.at[:b, A_H0:A_H0 + HIDDEN].set(h_t_prev)
    acts = acts.at[:b, A_NOISE:A_NOISE + 2].set(noise)

    vmem = pl.BlockSpec(memory_space=pltpu.MemorySpace.VMEM)
    out = pl.pallas_call(
        ram_kernel,
        out_shape=jax.ShapeDtypeStruct((BP, LANES), jnp.float32),
        in_specs=[vmem, vmem],
        out_specs=vmem,
    )(acts, w_slab)

    h_t = out[:b, O_H:O_H + HIDDEN]
    l_t = out[:b, O_L:O_L + 2]
    b_t = out[:b, O_B]
    log_probas = out[:b, O_LOGP:O_LOGP + NUM_CLASSES]
    log_pi = out[:b, O_LOGPI]
    if last:
        return h_t, l_t, b_t, log_probas, log_pi
    return h_t, l_t, b_t, log_pi


# ----------------------------- demo -----------------------------
if __name__ == "__main__":
    key = jax.random.PRNGKey(0)
    k_x, k_l, k_n, k_p = jax.random.split(key, 4)

    x = jax.random.uniform(k_x, (B, H_IMG, W_IMG, C), jnp.float32)       # NHWC image
    l_t_prev = jax.random.uniform(k_l, (B, 2), jnp.float32, -1.0, 1.0)   # previous loc
    h_t_prev = jnp.zeros((B, HIDDEN), jnp.float32)                       # reset() hidden
    noise = jax.random.normal(k_n, (B, 2), jnp.float32)                  # policy noise
    w_slab = pack_params(init_params(k_p))                               # one weight DMA

    h_t, l_t, b_t, log_probas, log_pi = ram_forward(
        x, l_t_prev, h_t_prev, noise, w_slab, last=True)
    jax.block_until_ready((h_t, l_t, b_t, log_probas, log_pi))

    assert h_t.shape == (B, HIDDEN)
    assert l_t.shape == (B, 2)
    assert b_t.shape == (B,)
    assert log_probas.shape == (B, NUM_CLASSES)
    assert log_pi.shape == (B,)
    # log_softmax rows must sum to 1 in prob space
    assert jnp.allclose(jnp.exp(log_probas).sum(axis=1), 1.0, atol=1e-4)
    # sampled locations stay in [-1, 1]
    assert jnp.all(jnp.abs(l_t) <= 1.0)
    assert jnp.all(jnp.isfinite(h_t)) and jnp.all(jnp.isfinite(log_pi))

    print("KERNEL_OK")
</pallas_src>

<mosaic_0001>
module attributes {stable_mosaic.version = 11 : i64} {
  func.func @ram_kernel(%arg0: memref<8x128xf32, #tpu.memory_space<vmem>>, %arg1: memref<288x128xf32, #tpu.memory_space<vmem>>, %arg2: memref<8x128xf32, #tpu.memory_space<vmem>>) attributes {dimension_semantics = [], scalar_prefetch = 0 : i64, scratch_operands = 0 : i64, tpu.core_type = #tpu.core_type<tc>} {
    %c0 = arith.constant 0 : index
    %c0_0 = arith.constant 0 : index
    %0 = vector.load %arg0[%c0, %c0_0] : memref<8x128xf32, #tpu.memory_space<vmem>>, vector<8x128xf32>
    %1 = vector.extract_strided_slice %0 {offsets = [0, 0], sizes = [8, 34], strides = [1, 1]} : vector<8x128xf32> to vector<8x34xf32>
    %2 = vector.extract_strided_slice %0 {offsets = [0, 34], sizes = [8, 32], strides = [1, 1]} : vector<8x128xf32> to vector<8x32xf32>
    %3 = vector.extract_strided_slice %0 {offsets = [0, 66], sizes = [8, 2], strides = [1, 1]} : vector<8x128xf32> to vector<8x2xf32>
    %c0_1 = arith.constant 0 : index
    %c0_2 = arith.constant 0 : index
    %4 = vector.load %arg1[%c0_1, %c0_2] : memref<288x128xf32, #tpu.memory_space<vmem>>, vector<34x64xf32>
    %c40 = arith.constant 40 : index
    %c0_3 = arith.constant 0 : index
    %5 = vector.load %arg1[%c40, %c0_3] : memref<288x128xf32, #tpu.memory_space<vmem>>, vector<1x64xf32>
    %cst = arith.constant dense<0.000000e+00> : vector<8x64xf32>
    %6 = tpu.matmul %1, %4, %cst {dimension_numbers = #tpu.dot_dimension_numbers<[1], [0], [0], [1], [0, 0, 1, 1], [], []>} : vector<8x34xf32>, vector<34x64xf32>, vector<8x64xf32> -> vector<8x64xf32>
    %7 = vector.broadcast %5 : vector<1x64xf32> to vector<8x64xf32>
    %8 = arith.addf %6, %7 : vector<8x64xf32>
    %cst_4 = arith.constant 0.000000e+00 : f32
    %9 = vector.broadcast %cst_4 : f32 to vector<8x64xf32>
    %10 = arith.maximumf %8, %9 : vector<8x64xf32>
    %c48 = arith.constant 48 : index
    %c0_5 = arith.constant 0 : index
    %11 = vector.load %arg1[%c48, %c0_5] : memref<288x128xf32, #tpu.memory_space<vmem>>, vector<64x64xf32>
    %c112 = arith.constant 112 : index
    %c0_6 = arith.constant 0 : index
    %12 = vector.load %arg1[%c112, %c0_6] : memref<288x128xf32, #tpu.memory_space<vmem>>, vector<1x64xf32>
    %cst_7 = arith.constant dense<0.000000e+00> : vector<8x64xf32>
    %13 = tpu.matmul %10, %11, %cst_7 {dimension_numbers = #tpu.dot_dimension_numbers<[1], [0], [0], [1], [0, 0, 1, 1], [], []>} : vector<8x64xf32>, vector<64x64xf32>, vector<8x64xf32> -> vector<8x64xf32>
    %14 = vector.broadcast %12 : vector<1x64xf32> to vector<8x64xf32>
    %15 = arith.addf %13, %14 : vector<8x64xf32>
    %cst_8 = arith.constant 0.000000e+00 : f32
    %16 = vector.broadcast %cst_8 : f32 to vector<8x64xf32>
    %17 = arith.maximumf %15, %16 : vector<8x64xf32>
    %c120 = arith.constant 120 : index
    %c0_9 = arith.constant 0 : index
    %18 = vector.load %arg1[%c120, %c0_9] : memref<288x128xf32, #tpu.memory_space<vmem>>, vector<96x32xf32>
    %c216 = arith.constant 216 : index
    %c0_10 = arith.constant 0 : index
    %19 = vector.load %arg1[%c216, %c0_10] : memref<288x128xf32, #tpu.memory_space<vmem>>, vector<1x32xf32>
    %20 = tpu.concatenate %17, %2 in 1 : vector<8x64xf32>, vector<8x32xf32> -> vector<8x96xf32>
    %cst_11 = arith.constant dense<0.000000e+00> : vector<8x32xf32>
    %21 = tpu.matmul %20, %18, %cst_11 {dimension_numbers = #tpu.dot_dimension_numbers<[1], [0], [0], [1], [0, 0, 1, 1], [], []>} : vector<8x96xf32>, vector<96x32xf32>, vector<8x32xf32> -> vector<8x32xf32>
    %22 = vector.broadcast %19 : vector<1x32xf32> to vector<8x32xf32>
    %23 = arith.addf %21, %22 : vector<8x32xf32>
    %cst_12 = arith.constant 0.000000e+00 : f32
    %24 = vector.broadcast %cst_12 : f32 to vector<8x32xf32>
    %25 = arith.maximumf %23, %24 : vector<8x32xf32>
    %c224 = arith.constant 224 : index
    %c0_13 = arith.constant 0 : index
    %26 = vector.load %arg1[%c224, %c0_13] : memref<288x128xf32, #tpu.memory_space<vmem>>, vector<32x27xf32>
    %c256 = arith.constant 256 : index
    %c0_14 = arith.constant 0 : index
    %27 = vector.load %arg1[%c256, %c0_14] : memref<288x128xf32, #tpu.memory_space<vmem>>, vector<1x27xf32>
    %cst_15 = arith.constant dense<0.000000e+00> : vector<8x27xf32>
    %28 = tpu.matmul %25, %26, %cst_15 {dimension_numbers = #tpu.dot_dimension_numbers<[1], [0], [0], [1], [0, 0, 1, 1], [], []>} : vector<8x32xf32>, vector<32x27xf32>, vector<8x27xf32> -> vector<8x27xf32>
    %29 = vector.broadcast %27 : vector<1x27xf32> to vector<8x27xf32>
    %30 = arith.addf %28, %29 : vector<8x27xf32>
    %31 = vector.extract_strided_slice %30 {offsets = [0, 0], sizes = [8, 16], strides = [1, 1]} : vector<8x27xf32> to vector<8x16xf32>
    %cst_16 = arith.constant 0.000000e+00 : f32
    %32 = vector.broadcast %cst_16 : f32 to vector<8x16xf32>
    %33 = arith.maximumf %31, %32 : vector<8x16xf32>
    %34 = vector.extract_strided_slice %30 {offsets = [0, 16], sizes = [8, 1], strides = [1, 1]} : vector<8x27xf32> to vector<8x1xf32>
    %35 = vector.extract_strided_slice %30 {offsets = [0, 17], sizes = [8, 10], strides = [1, 1]} : vector<8x27xf32> to vector<8x10xf32>
    %c264 = arith.constant 264 : index
    %c0_17 = arith.constant 0 : index
    %36 = vector.load %arg1[%c264, %c0_17] : memref<288x128xf32, #tpu.memory_space<vmem>>, vector<16x2xf32>
    %c280 = arith.constant 280 : index
    %c0_18 = arith.constant 0 : index
    %37 = vector.load %arg1[%c280, %c0_18] : memref<288x128xf32, #tpu.memory_space<vmem>>, vector<1x2xf32>
    %cst_19 = arith.constant dense<0.000000e+00> : vector<8x2xf32>
    %38 = tpu.matmul %33, %36, %cst_19 {dimension_numbers = #tpu.dot_dimension_numbers<[1], [0], [0], [1], [0, 0, 1, 1], [], []>} : vector<8x16xf32>, vector<16x2xf32>, vector<8x2xf32> -> vector<8x2xf32>
    %39 = vector.broadcast %37 : vector<1x2xf32> to vector<8x2xf32>
    %40 = arith.addf %38, %39 : vector<8x2xf32>
    %41 = math.tanh %40 : vector<8x2xf32>
    %cst_20 = arith.constant 1.000000e-01 : f32
    %42 = vector.broadcast %cst_20 : f32 to vector<8x2xf32>
    %43 = arith.mulf %42, %3 : vector<8x2xf32>
    %44 = arith.addf %41, %43 : vector<8x2xf32>
    %45 = arith.subf %44, %41 : vector<8x2xf32>
    %cst_21 = arith.constant 1.000000e+01 : f32
    %46 = vector.broadcast %cst_21 : f32 to vector<8x2xf32>
    %47 = arith.mulf %45, %46 : vector<8x2xf32>
    %cst_22 = arith.constant -5.000000e-01 : f32
    %48 = vector.broadcast %cst_22 : f32 to vector<8x2xf32>
    %49 = arith.mulf %48, %47 : vector<8x2xf32>
    %50 = arith.mulf %49, %47 : vector<8x2xf32>
    %cst_23 = arith.constant -2.30258512 : f32
    %51 = vector.broadcast %cst_23 : f32 to vector<8x2xf32>
    %52 = arith.subf %50, %51 : vector<8x2xf32>
    %cst_24 = arith.constant 0.918938517 : f32
    %53 = vector.broadcast %cst_24 : f32 to vector<8x2xf32>
    %54 = arith.subf %52, %53 : vector<8x2xf32>
    %cst_25 = arith.constant dense<0.000000e+00> : vector<8xf32>
    %55 = vector.multi_reduction <add>, %54, %cst_25 [1] : vector<8x2xf32> to vector<8xf32>
    %56 = vector.shape_cast %55 : vector<8xf32> to vector<8x1xf32>
    %cst_26 = arith.constant -1.000000e+00 : f32
    %cst_27 = arith.constant 1.000000e+00 : f32
    %57 = vector.broadcast %cst_26 : f32 to vector<8x2xf32>
    %58 = arith.maximumf %57, %44 : vector<8x2xf32>
    %59 = vector.broadcast %cst_27 : f32 to vector<8x2xf32>
    %60 = arith.minimumf %59, %58 : vector<8x2xf32>
    %cst_28 = arith.constant dense<0xFF800000> : vector<8xf32>
    %61 = vector.multi_reduction <maximumf>, %35, %cst_28 [1] : vector<8x10xf32> to vector<8xf32>
    %62 = vector.shape_cast %61 : vector<8xf32> to vector<8x1xf32>
    %63 = vector.broadcast %62 : vector<8x1xf32> to vector<8x10xf32>
    %64 = arith.subf %35, %63 : vector<8x10xf32>
    %65 = math.exp %64 : vector<8x10xf32>
    %cst_29 = arith.constant dense<0.000000e+00> : vector<8xf32>
    %66 = vector.multi_reduction <add>, %65, %cst_29 [1] : vector<8x10xf32> to vector<8xf32>
    %67 = vector.shape_cast %66 : vector<8xf32> to vector<8x1xf32>
    %68 = math.log %67 : vector<8x1xf32>
    %69 = arith.addf %62, %68 : vector<8x1xf32>
    %70 = vector.broadcast %69 : vector<8x1xf32> to vector<8x10xf32>
    %71 = arith.subf %35, %70 : vector<8x10xf32>
    %cst_30 = arith.constant 0.000000e+00 : f32
    %72 = vector.broadcast %cst_30 : f32 to vector<8x82xf32>
    %73 = tpu.concatenate %25, %60, %34, %71, %56, %72 in 1 : vector<8x32xf32>, vector<8x2xf32>, vector<8x1xf32>, vector<8x10xf32>, vector<8x1xf32>, vector<8x82xf32> -> vector<8x128xf32>
    %c0_31 = arith.constant 0 : index
    %c0_32 = arith.constant 0 : index
    %74 = vector.load %arg2[%c0_31, %c0_32] : memref<8x128xf32, #tpu.memory_space<vmem>>, vector<8x128xf32>
    tpu.vector_store %arg2[%c0_31, %c0_32], %73 {strides = array<i32>} : memref<8x128xf32, #tpu.memory_space<vmem>>, vector<8x128xf32>,
    return
  }
}

</mosaic_0001>

<bundles_post_ra>
// kernel: custom-call
= control target key start
LH: loop header
LB: loop body
LE: loop exit
PB: predicated region body
PF: predicated region fallthrough
CT: control target
= control target key end

     0   :  { %s6_s0 = inlined_call_operand.vmem [shape: f32[2,4,4,1], index: 0, kind: output, shape index: {}]  }

// kernel: custom-call.1
= control target key start
LH: loop header
LB: loop body
LE: loop exit
PB: predicated region body
PF: predicated region fallthrough
CT: control target
= control target key end

     0   :  { %s6_s0 = inlined_call_operand.vmem [shape: f32[2,8,8,1], index: 0, kind: output, shape index: {}]  }

// kernel: ram_forward.1
= control target key start
LH: loop header
LB: loop body
LE: loop exit
PB: predicated region body
PF: predicated region fallthrough
CT: control target
= control target key end

     0   :  { %v699_v0 = vmov 0.0|0.0   ;;  %vm700_vm0 = vmmov 0   ;;  %v701_v4 = vmov 0.0   ;;  %vm26_vm1 = vcmask 1041408   ;;  %s702_s14 = smov 30   ;;  %s703_s24 = smov 62   ;;  %s882_s1 = inlined_call_operand.vmem [shape: f32[288,128], index: 1, kind: input, shape index: {}]   ;;  %s883_s0 = inlined_call_operand.vmem [shape: f32[8,128], index: 0, kind: input, shape index: {}]   ;;  %s884_s2 = inlined_call_operand.vmem [shape: f32[8,128], index: 2, kind: output, shape index: {}]  }
   0x1   :  { %640 = vmatprep.subr.bf16.mxu0 %v699_v0  ;;  %v12_v1 = vld [vmem:[%s882_s1] sm:$0xff]  ;;  %v13_v2 = vld [vmem:[%s882_s1 + $0x8] sm:$0xff]  ;;  %v14_v3 = vld [vmem:[%s882_s1 + $0x10] sm:$0xff]  ;;  %573 = vmatprep.mubr.msk.f32.mxu0 %vm700_vm0, %v701_v4  ;;  %vm22_vm2 = vcmask 277504   ;;  %vm114_vm3 = vcmask 523264   ;;  %vm210_vm4 = vcmask 785408  }
   0x2   :  { %v641_v5 = vpack.c.bf16 %v13_v2, %v12_v1  ;;  %v15_v6 = vld [vmem:[%s882_s1 + $0x18] sm:$0xff]  ;;  %646 = vmatprep.subr.bf16.mxu1 %v699_v0  ;;  %592 = vmatprep.mubr.msk.f32.mxu1 %vm700_vm0, %v701_v4  ;;  %v101_v7 = vld [vmem:[%s882_s1 + $0x30] sm:$0xff]  ;;  %v103_v9 = vld [vmem:[%s882_s1 + $0x40] sm:$0xff]  ;;  %vm294_vm5 = vcmask 261120   ;;  %vm469_vm6 = vcmask 220296   ;;  %vm376_vm7 = vcmask 130048  }
   0x3   :  { %v102_v8 = vld [vmem:[%s882_s1 + $0x38] sm:$0xff]  ;;  %v644_v10 = vpack.c.bf16 %v15_v6, %v14_v3  ;;  %v104_v12 = vld [vmem:[%s882_s1 + $0x48] sm:$0xff]  ;;  %v105_v14 = vld [vmem:[%s882_s1 + $0x50] sm:$0xff]  ;;  %s704_s25 = smov 18   ;;  %s705_s26 = smov 111   ;;  %vm480_vm8 = vcmask 80896  }
   0x4   :  { %642 = vmatpush3.bf16.msra.mxu0 %v641_v5  ;;  %v647_v11 = vpack.c.bf16 %v102_v8, %v101_v7  ;;  %v650_v13 = vpack.c.bf16 %v104_v12, %v103_v9  ;;  %v106_v15 = vld [vmem:[%s882_s1 + $0x58] sm:$0xff]  ;;  %v16_v16 = vld [vmem:[%s882_s1 + $0x20] sm:$0x3]  ;;  %v108_v20 = vld [vmem:[%s882_s1 + $0x68] sm:$0xff]  ;;  %vm463_vm9 = vcmask 15360   ;;  %vm502_vm10 = vcmask 285696  }
   0x5   :  { %643 = vmatprep.subr.bf16.mxu0 %v699_v0  ;;  %v767_v17 = vld [vmem:[%s883_s0] sm:$0xff]  ;;  %v653_v18 = vpack.c.bf16 %v106_v15, %v105_v14  ;;  %v189_v22 = vld [vmem:[%s882_s1 + $0x78] sm:$0xff]  ;;  %v191_v24 = vld [vmem:[%s882_s1 + $0x88] sm:$0xff]  ;;  %vm504_vm11 = vcmask 367616   ;;  %vm506_vm12 = vcmask 375808  }
   0x6   :  { %648 = vmatpush3.bf16.msra.mxu1 %v647_v11  ;;  %v107_v19 = vld [vmem:[%s882_s1 + $0x60] sm:$0xff]  ;;  %202 = vrot.lane.b32.xlu0 %v767_v17, %s702_s14  ;;  %v192_v26 = vld [vmem:[%s882_s1 + $0x90] sm:$0xff]  ;;  %v193_v28 = vld [vmem:[%s882_s1 + $0x98] sm:$0xff]  ;;  %v451_v8 = vmul.f32 0.1, %v767_v17 }
   0x7   :  { %649 = vmatprep.subr.bf16.mxu1 %v699_v0  ;;  %v656_v21 = vpack.c.bf16 %v108_v20, %v107_v19  ;;  %v190_v23 = vld [vmem:[%s882_s1 + $0x80] sm:$0xff]  ;;  %v662_v27 = vpack.c.bf16 %v192_v26, %v191_v24  ;;  %v195_v31 = vld [vmem:[%s882_s1 + $0xa8] sm:$0xff]  ;;  %v196_v32 = vld [vmem:[%s882_s1 + $0xb0] sm:$0xff] }
   0x8   :  { %645 = vmatpush3.bf16.msra.mxu0 %v644_v10  ;;  %v659_v25 = vpack.c.bf16 %v190_v23, %v189_v22  ;;  %v194_v29 = vld [vmem:[%s882_s1 + $0xa0] sm:$0xff]  ;;  %v668_v33 = vpack.c.bf16 %v196_v32, %v195_v31  ;;  %v197_v34 = vld [vmem:[%s882_s1 + $0xb8] sm:$0xff]  ;;  %v513_v37 = vld [vmem:[%s882_s1 + $0x28] ss:$0 sm:$0xff] }
   0x9   :  { %571 = vmatprep.subr.mxu0 %v701_v4  ;;  %v665_v30 = vpack.c.bf16 %v194_v29, %v193_v28  ;;  %v198_v35 = vld [vmem:[%s882_s1 + $0xc0] sm:$0xff]  ;;  %v199_v42 = vld [vmem:[%s882_s1 + $0xc8] sm:$0xff]  ;;  %v200_v43 = vld [vmem:[%s882_s1 + $0xd0] sm:$0xff] }
   0xa   :  { %651 = vmatpush3.bf16.msra.mxu1 %v650_v13  ;;  %v671_v36 = vpack.c.bf16 %v198_v35, %v197_v34  ;;  %v674_v44 = vpack.c.bf16 %v200_v43, %v199_v42  ;;  %v285_v45 = vld [vmem:[%s882_s1 + $0xe0] sm:$0xff]  ;;  %v286_v46 = vld [vmem:[%s882_s1 + $0xe8] sm:$0xff]  ;;  %v516_v48 = vld [vmem:[%s882_s1 + $0x70] ss:$0 sm:$0xff] }
   0xb   :  { %652 = vmatprep.subr.bf16.mxu1 %v699_v0  ;;  %v677_v47 = vpack.c.bf16 %v286_v46, %v285_v45  ;;  %v287_v55 = vld [vmem:[%s882_s1 + $0xf0] sm:$0xff]  ;;  %v288_v56 = vld [vmem:[%s882_s1 + $0xf8] sm:$0xff]  ;;  %v369_v63 = vld [vmem:[%s882_s1 + $0x108] sm:$0xff] }
   0xc   :  { %572 = vmatpush3.msk.msra.mxu0 %vm26_vm1, %v16_v16  ;;  %v680_v57 = vpack.c.bf16 %v288_v56, %v287_v55  ;;  %v518_v58 = vld [vmem:[%s882_s1 + $0xd8] ss:$0 sm:$0xff]  ;;  %v520_v2 = vld [vmem:[%s882_s1 + $0x100] ss:$0 sm:$0xff] }
   0xd   :  { %574 = vmatmul.mubr.msk.f32.vlgmr.msra.gmra.mrb[0].mxu0 %vm22_vm2, %v767_v17  ;;  %658 = vmatprep.subr.bf16.mxu0 %v699_v0  ;;  %v522_v15 = vld [vmem:[%s882_s1 + $0x118] ss:$0 sm:$0xff] }
   0xe   :  { %654 = vmatpush3.bf16.msra.mxu1 %v653_v18  ;;  %619 = vmatprep.mubr.msk.f32.mxu0 %vm700_vm0, %v701_v4 }
   0xf   :  { %655 = vmatprep.subr.bf16.mxu1 %v699_v0  ;;  %660 = vmatpush3.bf16.msra.mxu0 %v659_v25 }
  0x10   :  { %661 = vmatprep.subr.bf16.mxu0 %v699_v0 }
  0x12   :  { %657 = vmatpush3.bf16.msra.mxu1 %v656_v21 }
  0x13   :  { %676 = vmatprep.subr.bf16.mxu1 %v699_v0  ;;  %663 = vmatpush3.bf16.msra.mxu0 %v662_v27 }
  0x14   :  { %664 = vmatprep.subr.bf16.mxu0 %v699_v0 }
  0x17   :  { %666 = vmatpush3.bf16.msra.mxu0 %v665_v30 }
  0x18   :  { %667 = vmatprep.subr.bf16.mxu0 %v699_v0 }
  0x1b   :  { %669 = vmatpush3.bf16.msra.mxu0 %v668_v33 }
  0x1c   :  { %670 = vmatprep.subr.bf16.mxu0 %v699_v0 }
  0x1f   :  { %672 = vmatpush3.bf16.msra.mxu0 %v671_v36 }
  0x20   :  { %673 = vmatprep.subr.bf16.mxu0 %v699_v0 }
  0x23   :  { %675 = vmatpush3.bf16.msra.mxu0 %v674_v44 }
  0x78   :  { %v203_v52 = vpop.permute.xlu0 %202 }
  0xe0   :  { %v96_v38 = vpop.f32.mrb[0].mxu0 }
  0xe1   :  { %v97_v39 = vadd.f32 %v513_v37, %v96_v38  ;;  %v575_v40 = vpop.f32.mrb[1].mxu0 }
  0xe3   :  { %v100_v41 = vmax.f32 %v97_v39, 0.0 }
  0xe5   :  { %593 = vmatmul.mubr.msk.f32.vlgmr.msra.gmra.mrb[0].mxu1 %vm114_vm3, %v100_v41 }
  0xe6   :  { %630 = vmatprep.mubr.msk.f32.mxu1 %vm700_vm0, %v701_v4  ;;  %678 = vmatpush3.bf16.msra.mxu1 %v677_v47 }
  0xe7   :  { %679 = vmatprep.subr.bf16.mxu1 %v699_v0 }
  0xea   :  { %681 = vmatpush3.bf16.msra.mxu1 %v680_v57 }
  0xeb   :  { %682 = vmatprep.subr.bf16.mxu1 %v699_v0  ;;  %v370_v0 = vld [vmem:[%s882_s1 + $0x110] sm:$0xff]  ;;  %s706_s1 = smov 32  }
  0xec   :  { %v683_v1 = vpack.c.bf16 %v370_v0, %v369_v63 }
 0x1b8   :  { %v184_v49 = vpop.f32.mrb[0].mxu1 }
 0x1b9   :  { %v185_v50 = vadd.f32 %v516_v48, %v184_v49  ;;  %v594_v51 = vpop.f32.mrb[1].mxu1 }
 0x1bb   :  { %v188_v53 = vmax.f32 %v185_v50, 0.0 }
 0x1bd   :  { %v205_v54 = vsel %vm114_vm3, %v188_v53, %v203_v52 }
 0x1be   :  { %620 = vmatmul.mubr.msk.f32.vlgmr.msra.gmra.mrb[2].mxu0 %vm210_vm4, %v205_v54 }
 0x291   :  { %v280_v59 = vpop.f32.mrb[2].mxu0 }
 0x292   :  { %v852_v60 = vadd.f32 %v518_v58, %v280_v59  ;;  %v621_v61 = vpop.f32.mrb[3].mxu0 }
 0x294   :  { %v284_v62 = vmax.f32 %v852_v60, 0.0 }
 0x296   :  { %631 = vmatmul.mubr.msk.f32.vlgmr.msra.gmra.mrb[2].mxu1 %vm294_vm5, %v284_v62 }
 0x297   :  { %637 = vmatprep.mubr.msk.f32.mxu1 %vm700_vm0, %v701_v4  ;;  %684 = vmatpush3.bf16.msra.mxu1 %v683_v1 }
 0x369   :  { %v364_v3 = vpop.f32.mrb[2].mxu1 }
 0x36a   :  { %v365_v5 = vadd.f32 %v520_v2, %v364_v3  ;;  %v632_v6 = vpop.f32.mrb[3].mxu1 }
 0x36c   :  { %v470_v4 = vsel %vm469_vm6, %v365_v5, -inf  ;;  %v368_v7 = vmax.f32 %v365_v5, 0.0 }
 0x36d   :  { %471 = vmax.xlane.f32.xlu0 %v470_v4 }
 0x36e   :  { %638 = vmatmul.mubr.msk.f32.vlgmr.msra.gmra.mrb[4].mxu1 %vm376_vm7, %v368_v7 }
 0x383   :  { %453 = vrot.lane.b32.xlu0 %v451_v8, %s703_s24 }
 0x387   :  { %493 = vrot.lane.b32.xlu0 %v365_v5, %s704_s25 }
 0x3fa   :  { %v472_v9 = vpop.xlane.xlu0 %471 }
 0x3fb   :  { %v473_v10 = vsub.f32 %v365_v5, %v472_v9 }
 0x3fd   :  { %v474_v11 = vmul.f32 1.442695, %v473_v10 }
 0x3fe   :  { %v454_v18 = vpop.permute.xlu0 %453 }
 0x3ff   :  { %693 = vpow2.f32 %v474_v11 }
 0x402   :  { %v494_v37 = vpop.permute.xlu0 %493 }
 0x409   :  { %v694_v12 = vpop.eup %693 }
 0x40a   :  { %477 = vrot.lane.b32.xlu1 %v694_v12, %s705_s26 }
 0x441   :  { %v446_v13 = vpop.f32.mrb[4].mxu1 }
 0x442   :  { %v639_v14 = vpop.f32.mrb[5].mxu1  ;;  %v447_v16 = vadd.f32 %v522_v15, %v446_v13 }
 0x444   :  { %695 = vtanh.f32 %v447_v16 }
 0x44e   :  { %v696_v17 = vpop.eup %695 }
 0x44f   :  { %v456_v19 = vadd.f32 %v696_v17, %v454_v18 }
 0x451   :  { %v457_v20 = vsub.f32 %v456_v19, %v696_v17  ;;  %v526_v29 = vclamps-f32 %v456_v19, 1.0 }
 0x453   :  { %v458_v21 = vmul.f32 10.0, %v457_v20 }
 0x455   :  { %v459_v22 = vmul.f32 -0.5, %v458_v21 }
 0x457   :  { %v460_v23 = vmul.f32 %v459_v22, %v458_v21 }
 0x459   :  { %v524_v24 = vadd.f32 2.3025851, %v460_v23 }
 0x45b   :  { %v525_v27 = vadd.f32 -0.9189385, %v524_v24 }
 0x45d   :  { %v464_v28 = vsel %vm463_vm9, %v525_v27, 0.0 }
 0x47c   :  { %v478_v25 = vpop.permute.xlu1 %477 }
 0x47d   :  { %v481_v26 = vsel %vm480_vm8, %v478_v25, 0.0 }
 0x47e   :  { %482 = vadd.xlane.f32.xlu1 %v481_v26 }
 0x482   :  { %465 = vadd.xlane.f32.xlu1 %v464_v28 }
 0x493   :  { %489 = vrot.lane.b32.xlu1 %v526_v29, %s706_s1 }
 0x50b   :  { %v483_v30 = vpop.xlane.xlu1 %482 }
 0x50c   :  { %697 = vlog2.f32 %v483_v30 }
 0x50f   :  { %v466_v35 = vpop.xlane.xlu1 %465 }
 0x513   :  { %v490_v36 = vpop.permute.xlu1 %489 }
 0x514   :  { %v500_v38 = vsel %vm294_vm5, %v284_v62, %v490_v36 }
 0x515   :  { %v501_v40 = vsel %vm22_vm2, %v500_v38, %v494_v37 }
 0x516   :  { %v698_v31 = vpop.eup %697 }
 0x517   :  { %v485_v32 = vmul.f32 0.6931472, %v698_v31 }
 0x519   :  { %v486_v33 = vadd.f32 %v485_v32, %v472_v9 }
 0x51b   :  { %v487_v34 = vsub.f32 %v365_v5, %v486_v33 }
 0x51d   :  { %497 = vrot.lane.b32.xlu0 %v487_v34, %s704_s25 }
 0x58f   :  { %v498_v39 = vpop.permute.xlu0 %497 }
 0x590   :  { %v503_v41 = vsel %vm502_vm10, %v501_v40, %v498_v39 }
 0x591   :  { %v505_v42 = vsel %vm504_vm11, %v503_v41, %v466_v35 }
 0x592   :  { %v507_v43 = vsel %vm506_vm12, %v505_v42, 0.0 }
 0x593   :  { %508 = vst [vmem:[%s884_s2] sm:$0xff] %v507_v43 }

</bundles_post_ra>
